<compile_context>
chip_gen: v7x
topology: tpu7x:2x2x1
jax: 0.10.0
libtpu: 0.0.40
codegen_flags: <defaults>
</compile_context>

<pallas_src>
import functools

import jax
import jax.numpy as jnp
from jax.experimental import pallas as pl
from jax.experimental.pallas import tpu as pltpu

_LANE = 128


def _round_up(v, m):
    return (v + m - 1) // m * m


def _round_kernel(p_ref, x_ref, w1_ref, b1_ref, w2_ref, b2_ref, w3_ref, b3_ref,
                  mask_ref, out_ref, *, continuous_update, tol, final_relu):
    # Blocks arrive in natural (batch, feature) layout straight from HBM.
    # Transpose the tiny feature dims to batch-on-lanes here (XLU; idle slot) so
    # the matmul N dim and every elementwise vreg are lane-dense.
    pT = jnp.transpose(p_ref[...])            # (P, bt)
    xT = jnp.transpose(x_ref[...])            # (X, bt)  stays f32 for floor/ceil path
    mm_dt = w1_ref.dtype                      # f32, or bf16 when bf16_matmul=True

    # cat([p, x], -1) @ W1^T  ==  W1 @ [p ; x]^T  -> one fused K=P+X MXU pass.
    fT = jnp.concatenate([pT, xT], axis=0).astype(mm_dt)             # (P+X, bt)
    h = jnp.dot(w1_ref[...], fT, preferred_element_type=jnp.float32) + b1_ref[...]
    h = jnp.maximum(h, 0.0)                                           # layerFC 1
    h = jnp.maximum(
        jnp.dot(w2_ref[...], h.astype(mm_dt),
                preferred_element_type=jnp.float32) + b2_ref[...], 0.0)  # layerFC 2
    h = jnp.dot(w3_ref[...], h.astype(mm_dt),
                preferred_element_type=jnp.float32) + b3_ref[...]        # layerFC 3
    if final_relu:
        # TODO(synk): layerFC assumed Linear+ReLU for every layer (incl. the last);
        # pass final_relu=False if the real layerFC omits the terminal ReLU.
        h = jnp.maximum(h, 0.0)

    # diffFloor / diffBinarize / _intMask (all elementwise on the VPU, f32)
    x_flr = jnp.floor(xT)
    x_cl = jnp.ceil(xT)
    bnr = jnp.where(h >= 0.0, 1.0, 0.0)                    # diffBinarize forward
    bnr = jnp.where(jnp.abs(xT - x_flr) < tol, 0.0, bnr)   # _intMask: floor side
    bnr = jnp.where(jnp.abs(xT - x_cl) < tol, 1.0, bnr)    # _intMask: ceil side wins

    cont = xT + h if continuous_update else xT             # constant-folded at trace
    is_int = mask_ref[...] > 0.5                           # (X, 1) integer-row mask
    outT = jnp.where(is_int, x_flr + bnr, cont)            # single select blend
    out_ref[...] = jnp.transpose(outT).astype(out_ref.dtype)   # back to (bt, X)


def _tpu_vmem_capacity():
    try:
        return int(pltpu.get_tpu_info().vmem_capacity_bytes)
    except Exception:
        return 64 << 20           # assume v7x (smallest VMEM) if the query fails


def _pick_batch_tile(B, cap):
    """Whole batch for tiny B; otherwise >=2 grid steps (so the 'parallel' axis
    shards across v7x's 2 TensorCores), tiles a multiple of 256 (lane-aligned
    after the in-kernel transpose), preferring an exact divisor of B.  A
    non-divisor tile is fine: the grid uses pl.cdiv and the tail is masked."""
    if B <= 256:
        return B
    bt = min(cap, _round_up(pl.cdiv(B, 2), 256))
    bt -= bt % 256
    for t in range(bt, 255, -256):            # prefer no ragged tail
        if B % t == 0:
            return t
    return max(256, bt)


def round_model_forward(p, x, params, int_mask, *, continuous_update=False,
                        tolerance=1e-3, batch_tile=None, bf16_matmul=False,
                        final_relu=True):
    """p: (B, P) f32, x: (B, X) f32.  params = (W1, b1, W2, b2, W3, b3) with
    weights in PyTorch (out, in) layout (W1 fused over [p|x]) and biases (out, 1).
    Returns (B, X) f32.  No wrapper-side transposes / layout copies."""
    w1, b1, w2, b2, w3, b3 = params
    B, P = p.shape
    X = x.shape[1]
    H = w2.shape[0]

    vmem_cap = _tpu_vmem_capacity()
    big_vmem = vmem_cap >= (100 << 20)        # v5e/v6e: 128 MiB; v7x: 64 MiB per TC
    bt_cap = 8192 if big_vmem else 4096
    bt = batch_tile if batch_tile is not None else _pick_batch_tile(B, bt_cap)
    grid = (pl.cdiv(B, bt),)

    mask_col = int_mask.reshape(X, 1).astype(jnp.float32)

    if bf16_matmul:
        # HBM/MXU relief (mostly relevant on v5e).  x stays f32; it is cast to
        # bf16 only as an MXU operand inside the kernel.
        w1c, w2c, w3c = (w.astype(jnp.bfloat16) for w in (w1, w2, w3))
    else:
        w1c, w2c, w3c = w1, w2, w3

    kernel = functools.partial(
        _round_kernel,
        continuous_update=bool(continuous_update),
        tol=float(tolerance),
        final_relu=bool(final_relu),
    )

    # Constants (weights/biases/mask) use a fixed index map; Pallas only re-DMAs
    # a block when its block index changes, and they are a few KiB.
    fixed = lambda i: (0, 0)
    grid_spec = pltpu.PrefetchScalarGridSpec(
        num_scalar_prefetch=0,
        grid=grid,
        in_specs=[
            pl.BlockSpec((bt, P), lambda i: (i, 0)),     # p  (natural layout)
            pl.BlockSpec((bt, X), lambda i: (i, 0)),     # x  (natural layout)
            pl.BlockSpec((H, P + X), fixed),             # W1 (fused [p|x] columns)
            pl.BlockSpec((H, 1), fixed),                 # b1
            pl.BlockSpec((H, H), fixed),                 # W2
            pl.BlockSpec((H, 1), fixed),                 # b2
            pl.BlockSpec((X, H), fixed),                 # W3
            pl.BlockSpec((X, 1), fixed),                 # b3
            pl.BlockSpec((X, 1), fixed),                 # integer-row mask
        ],
        out_specs=pl.BlockSpec((bt, X), lambda i: (i, 0)),
    )

    # VMEM budget: natural-layout tiles are lane-padded to 128 in VMEM, so count
    # the padded double-buffered p/x/out tiles plus in-kernel transposed copies /
    # activations, then cap per generation (generous on 128-MiB v5e/v6e,
    # conservative on 64-MiB v7x).
    f32b = 4
    pad = lambda n: _round_up(n, _LANE)
    pipelined = 2 * bt * (pad(P) + 2 * pad(X)) * f32b
    inner = bt * (P + X + 3 * H + 4 * X) * f32b
    scoped_cap = (96 << 20) if big_vmem else (28 << 20)
    vmem_limit = min(max(int(1.4 * (pipelined + inner)) + (2 << 20), 8 << 20),
                     scoped_cap)

    out = pl.pallas_call(
        kernel,
        out_shape=jax.ShapeDtypeStruct((B, X), jnp.float32),
        grid_spec=grid_spec,
        compiler_params=pltpu.CompilerParams(
            dimension_semantics=("parallel",),
            vmem_limit_bytes=vmem_limit),
    )(p, x, w1c, b1, w2c, b2, w3c, b3, mask_col)
    return out


def _reference_forward(p, x, params, int_mask, continuous_update, tolerance,
                       final_relu=True):
    """Pure-JAX reference mirroring the PyTorch forward (weights in (out, in))."""
    w1, b1, w2, b2, w3, b3 = params
    f = jnp.concatenate([p, x], axis=-1)
    h = jnp.maximum(f @ w1.T + b1.T, 0.0)
    h = jnp.maximum(h @ w2.T + b2.T, 0.0)
    h = h @ w3.T + b3.T
    if final_relu:
        h = jnp.maximum(h, 0.0)
    x_flr = jnp.floor(x)
    bnr = jnp.where(h >= 0.0, 1.0, 0.0)
    bnr = jnp.where(jnp.abs(x - x_flr) < tolerance, 0.0, bnr)
    bnr = jnp.where(jnp.abs(x - jnp.ceil(x)) < tolerance, 1.0, bnr)
    m = int_mask.reshape(1, -1) > 0.5
    cont = x + h if continuous_update else x
    return jnp.where(m, x_flr + bnr, cont)


if __name__ == "__main__":
    # Shapes consistent with the module:
    #   p_dim=8, x_dim=16 -> input_dim=24, hidden_dims=[32, 32], output_dim=16
    #   int_ind = first 8 columns of x (and of h)
    # B=512 -> batch_tile 256, grid (2,): exercises the multi-step / dual-TC path.
    B, P_DIM, X_DIM, HID = 512, 8, 16, 32
    key = jax.random.PRNGKey(0)
    kp, kx, k1, k2, k3, kb1, kb2, kb3 = jax.random.split(key, 8)

    p = jax.random.normal(kp, (B, P_DIM), dtype=jnp.float32)
    x = 4.0 * jax.random.normal(kx, (B, X_DIM), dtype=jnp.float32)
    # a couple of exactly-integral entries to exercise _intMask's tolerance masks
    x = x.at[0, 0].set(3.0).at[1, 2].set(-2.0)

    scale = 0.1
    # nn.Linear weights are (out, in); W1 stays fused over the [p | x] columns.
    w1 = scale * jax.random.normal(k1, (HID, P_DIM + X_DIM), dtype=jnp.float32)
    b1 = scale * jax.random.normal(kb1, (HID, 1), dtype=jnp.float32)
    w2 = scale * jax.random.normal(k2, (HID, HID), dtype=jnp.float32)
    b2 = scale * jax.random.normal(kb2, (HID, 1), dtype=jnp.float32)
    w3 = scale * jax.random.normal(k3, (X_DIM, HID), dtype=jnp.float32)
    b3 = scale * jax.random.normal(kb3, (X_DIM, 1), dtype=jnp.float32)
    params = (w1, b1, w2, b2, w3, b3)

    int_ind = jnp.arange(8)                     # first 8 columns are integer vars
    int_mask = jnp.zeros((X_DIM,), jnp.float32).at[int_ind].set(1.0)

    out = round_model_forward(p, x, params, int_mask,
                              continuous_update=False, tolerance=1e-3)
    out = jax.block_until_ready(out)
    ref = _reference_forward(p, x, params, int_mask, False, 1e-3)
    assert out.shape == (B, X_DIM)
    assert jnp.allclose(out, ref, atol=1e-5), "mismatch vs JAX reference"

    # also exercise the continuous_update=True (constant-folded) path
    out_cu = jax.block_until_ready(
        round_model_forward(p, x, params, int_mask,
                            continuous_update=True, tolerance=1e-3))
    ref_cu = _reference_forward(p, x, params, int_mask, True, 1e-3)
    assert jnp.allclose(out_cu, ref_cu, atol=1e-5), "mismatch (continuous_update)"

    print("KERNEL_OK")
</pallas_src>

<mosaic_0001>
module attributes {stable_mosaic.version = 11 : i64} {
  func.func @_round_kernel(%arg0: i32, %arg1: memref<256x8xf32, #tpu.memory_space<vmem>>, %arg2: memref<256x16xf32, #tpu.memory_space<vmem>>, %arg3: memref<32x24xf32, #tpu.memory_space<vmem>>, %arg4: memref<32x1xf32, #tpu.memory_space<vmem>>, %arg5: memref<32x32xf32, #tpu.memory_space<vmem>>, %arg6: memref<32x1xf32, #tpu.memory_space<vmem>>, %arg7: memref<16x32xf32, #tpu.memory_space<vmem>>, %arg8: memref<16x1xf32, #tpu.memory_space<vmem>>, %arg9: memref<16x1xf32, #tpu.memory_space<vmem>>, %arg10: memref<256x16xf32, #tpu.memory_space<vmem>>) attributes {dimension_semantics = [#tpu.dimension_semantics<parallel>], iteration_bounds = array<i64: 2>, scalar_prefetch = 0 : i64, scratch_operands = 0 : i64, tpu.core_type = #tpu.core_type<tc>, window_params = [{transform_indices = @transform_0, window_bounds = array<i64: 256, 8>}, {transform_indices = @transform_1, window_bounds = array<i64: 256, 16>}, {pipeline_mode = #tpu.pipeline_mode<synchronous>, transform_indices = @transform_2, window_bounds = array<i64: 32, 24>}, {pipeline_mode = #tpu.pipeline_mode<synchronous>, transform_indices = @transform_3, window_bounds = array<i64: 32, 1>}, {pipeline_mode = #tpu.pipeline_mode<synchronous>, transform_indices = @transform_4, window_bounds = array<i64: 32, 32>}, {pipeline_mode = #tpu.pipeline_mode<synchronous>, transform_indices = @transform_5, window_bounds = array<i64: 32, 1>}, {pipeline_mode = #tpu.pipeline_mode<synchronous>, transform_indices = @transform_6, window_bounds = array<i64: 16, 32>}, {pipeline_mode = #tpu.pipeline_mode<synchronous>, transform_indices = @transform_7, window_bounds = array<i64: 16, 1>}, {pipeline_mode = #tpu.pipeline_mode<synchronous>, transform_indices = @transform_8, window_bounds = array<i64: 16, 1>}, {transform_indices = @transform_9, window_bounds = array<i64: 256, 16>}]} {
    %c0 = arith.constant 0 : index
    %c0_0 = arith.constant 0 : index
    %0 = vector.load %arg1[%c0, %c0_0] : memref<256x8xf32, #tpu.memory_space<vmem>>, vector<256x8xf32>
    %1 = tpu.transpose %0, [1, 0] : vector<256x8xf32> -> vector<8x256xf32>
    %c0_1 = arith.constant 0 : index
    %c0_2 = arith.constant 0 : index
    %2 = vector.load %arg2[%c0_1, %c0_2] : memref<256x16xf32, #tpu.memory_space<vmem>>, vector<256x16xf32>
    %3 = tpu.transpose %2, [1, 0] : vector<256x16xf32> -> vector<16x256xf32>
    %4 = tpu.concatenate %1, %3 in 0 : vector<8x256xf32>, vector<16x256xf32> -> vector<24x256xf32>
    %c0_3 = arith.constant 0 : index
    %c0_4 = arith.constant 0 : index
    %5 = vector.load %arg3[%c0_3, %c0_4] : memref<32x24xf32, #tpu.memory_space<vmem>>, vector<32x24xf32>
    %cst = arith.constant dense<0.000000e+00> : vector<32x256xf32>
    %6 = tpu.matmul %5, %4, %cst {dimension_numbers = #tpu.dot_dimension_numbers<[1], [0], [0], [1], [0, 0, 1, 1], [], []>} : vector<32x24xf32>, vector<24x256xf32>, vector<32x256xf32> -> vector<32x256xf32>
    %c0_5 = arith.constant 0 : index
    %c0_6 = arith.constant 0 : index
    %7 = vector.load %arg4[%c0_5, %c0_6] : memref<32x1xf32, #tpu.memory_space<vmem>>, vector<32x1xf32>
    %8 = vector.broadcast %7 : vector<32x1xf32> to vector<32x256xf32>
    %9 = arith.addf %6, %8 : vector<32x256xf32>
    %cst_7 = arith.constant 0.000000e+00 : f32
    %10 = vector.broadcast %cst_7 : f32 to vector<32x256xf32>
    %11 = arith.maximumf %9, %10 : vector<32x256xf32>
    %c0_8 = arith.constant 0 : index
    %c0_9 = arith.constant 0 : index
    %12 = vector.load %arg5[%c0_8, %c0_9] : memref<32x32xf32, #tpu.memory_space<vmem>>, vector<32x32xf32>
    %cst_10 = arith.constant dense<0.000000e+00> : vector<32x256xf32>
    %13 = tpu.matmul %12, %11, %cst_10 {dimension_numbers = #tpu.dot_dimension_numbers<[1], [0], [0], [1], [0, 0, 1, 1], [], []>} : vector<32x32xf32>, vector<32x256xf32>, vector<32x256xf32> -> vector<32x256xf32>
    %c0_11 = arith.constant 0 : index
    %c0_12 = arith.constant 0 : index
    %14 = vector.load %arg6[%c0_11, %c0_12] : memref<32x1xf32, #tpu.memory_space<vmem>>, vector<32x1xf32>
    %15 = vector.broadcast %14 : vector<32x1xf32> to vector<32x256xf32>
    %16 = arith.addf %13, %15 : vector<32x256xf32>
    %cst_13 = arith.constant 0.000000e+00 : f32
    %17 = vector.broadcast %cst_13 : f32 to vector<32x256xf32>
    %18 = arith.maximumf %16, %17 : vector<32x256xf32>
    %c0_14 = arith.constant 0 : index
    %c0_15 = arith.constant 0 : index
    %19 = vector.load %arg7[%c0_14, %c0_15] : memref<16x32xf32, #tpu.memory_space<vmem>>, vector<16x32xf32>
    %cst_16 = arith.constant dense<0.000000e+00> : vector<16x256xf32>
    %20 = tpu.matmul %19, %18, %cst_16 {dimension_numbers = #tpu.dot_dimension_numbers<[1], [0], [0], [1], [0, 0, 1, 1], [], []>} : vector<16x32xf32>, vector<32x256xf32>, vector<16x256xf32> -> vector<16x256xf32>
    %c0_17 = arith.constant 0 : index
    %c0_18 = arith.constant 0 : index
    %21 = vector.load %arg8[%c0_17, %c0_18] : memref<16x1xf32, #tpu.memory_space<vmem>>, vector<16x1xf32>
    %22 = vector.broadcast %21 : vector<16x1xf32> to vector<16x256xf32>
    %23 = arith.addf %20, %22 : vector<16x256xf32>
    %cst_19 = arith.constant 0.000000e+00 : f32
    %24 = vector.broadcast %cst_19 : f32 to vector<16x256xf32>
    %25 = arith.maximumf %23, %24 : vector<16x256xf32>
    %26 = math.floor %3 : vector<16x256xf32>
    %27 = math.ceil %3 : vector<16x256xf32>
    %cst_20 = arith.constant 0.000000e+00 : f32
    %28 = vector.broadcast %cst_20 : f32 to vector<16x256xf32>
    %29 = arith.cmpf oge, %25, %28 : vector<16x256xf32>
    %cst_21 = arith.constant 1.000000e+00 : f32
    %cst_22 = arith.constant 0.000000e+00 : f32
    %30 = vector.broadcast %cst_21 : f32 to vector<16x256xf32>
    %31 = vector.broadcast %cst_22 : f32 to vector<16x256xf32>
    %32 = arith.select %29, %30, %31 : vector<16x256xi1>, vector<16x256xf32>
    %33 = arith.subf %3, %26 : vector<16x256xf32>
    %34 = math.absf %33 : vector<16x256xf32>
    %cst_23 = arith.constant 1.000000e-03 : f32
    %35 = vector.broadcast %cst_23 : f32 to vector<16x256xf32>
    %36 = arith.cmpf olt, %34, %35 : vector<16x256xf32>
    %cst_24 = arith.constant 0.000000e+00 : f32
    %37 = vector.broadcast %cst_24 : f32 to vector<16x256xf32>
    %38 = arith.select %36, %37, %32 : vector<16x256xi1>, vector<16x256xf32>
    %39 = arith.subf %3, %27 : vector<16x256xf32>
    %40 = math.absf %39 : vector<16x256xf32>
    %cst_25 = arith.constant 1.000000e-03 : f32
    %41 = vector.broadcast %cst_25 : f32 to vector<16x256xf32>
    %42 = arith.cmpf olt, %40, %41 : vector<16x256xf32>
    %cst_26 = arith.constant 1.000000e+00 : f32
    %43 = vector.broadcast %cst_26 : f32 to vector<16x256xf32>
    %44 = arith.select %42, %43, %38 : vector<16x256xi1>, vector<16x256xf32>
    %c0_27 = arith.constant 0 : index
    %c0_28 = arith.constant 0 : index
    %45 = vector.load %arg9[%c0_27, %c0_28] : memref<16x1xf32, #tpu.memory_space<vmem>>, vector<16x1xf32>
    %cst_29 = arith.constant 5.000000e-01 : f32
    %46 = vector.broadcast %cst_29 : f32 to vector<16x1xf32>
    %47 = arith.cmpf ogt, %45, %46 : vector<16x1xf32>
    %48 = arith.addf %26, %44 : vector<16x256xf32>
    %49 = vector.shape_cast %47 : vector<16x1xi1> to vector<16x1xi1>
    %50 = vector.broadcast %49 : vector<16x1xi1> to vector<16x256xi1>
    %51 = arith.select %50, %48, %3 : vector<16x256xi1>, vector<16x256xf32>
    %52 = tpu.transpose %51, [1, 0] : vector<16x256xf32> -> vector<256x16xf32>
    %c0_30 = arith.constant 0 : index
    %c0_31 = arith.constant 0 : index
    %53 = vector.load %arg10[%c0_30, %c0_31] : memref<256x16xf32, #tpu.memory_space<vmem>>, vector<256x16xf32>
    tpu.vector_store %arg10[%c0_30, %c0_31], %52 {strides = array<i32>} : memref<256x16xf32, #tpu.memory_space<vmem>>, vector<256x16xf32>,
    return
  }
  func.func @transform_0(%arg0: i32) -> (i32, i32) {
    %c0_i32 = arith.constant 0 : i32
    %c0_i32_0 = arith.constant 0 : i32
    return %arg0, %c0_i32 : i32, i32
  }
  func.func @transform_1(%arg0: i32) -> (i32, i32) {
    %c0_i32 = arith.constant 0 : i32
    %c0_i32_0 = arith.constant 0 : i32
    return %arg0, %c0_i32 : i32, i32
  }
  func.func @transform_2(%arg0: i32) -> (i32, i32) {
    %c0_i32 = arith.constant 0 : i32
    %c0_i32_0 = arith.constant 0 : i32
    %c0_i32_1 = arith.constant 0 : i32
    return %c0_i32, %c0_i32_0 : i32, i32
  }
  func.func @transform_3(%arg0: i32) -> (i32, i32) {
    %c0_i32 = arith.constant 0 : i32
    %c0_i32_0 = arith.constant 0 : i32
    %c0_i32_1 = arith.constant 0 : i32
    return %c0_i32, %c0_i32_0 : i32, i32
  }
  func.func @transform_4(%arg0: i32) -> (i32, i32) {
    %c0_i32 = arith.constant 0 : i32
    %c0_i32_0 = arith.constant 0 : i32
    %c0_i32_1 = arith.constant 0 : i32
    return %c0_i32, %c0_i32_0 : i32, i32
  }
  func.func @transform_5(%arg0: i32) -> (i32, i32) {
    %c0_i32 = arith.constant 0 : i32
    %c0_i32_0 = arith.constant 0 : i32
    %c0_i32_1 = arith.constant 0 : i32
    return %c0_i32, %c0_i32_0 : i32, i32
  }
  func.func @transform_6(%arg0: i32) -> (i32, i32) {
    %c0_i32 = arith.constant 0 : i32
    %c0_i32_0 = arith.constant 0 : i32
    %c0_i32_1 = arith.constant 0 : i32
    return %c0_i32, %c0_i32_0 : i32, i32
  }
  func.func @transform_7(%arg0: i32) -> (i32, i32) {
    %c0_i32 = arith.constant 0 : i32
    %c0_i32_0 = arith.constant 0 : i32
    %c0_i32_1 = arith.constant 0 : i32
    return %c0_i32, %c0_i32_0 : i32, i32
  }
  func.func @transform_8(%arg0: i32) -> (i32, i32) {
    %c0_i32 = arith.constant 0 : i32
    %c0_i32_0 = arith.constant 0 : i32
    %c0_i32_1 = arith.constant 0 : i32
    return %c0_i32, %c0_i32_0 : i32, i32
  }
  func.func @transform_9(%arg0: i32) -> (i32, i32) {
    %c0_i32 = arith.constant 0 : i32
    %c0_i32_0 = arith.constant 0 : i32
    return %arg0, %c0_i32 : i32, i32
  }
}

</mosaic_0001>

<bundles_post_ra>
// kernel: tpu_custom_call.1
= control target key start
LH: loop header
LB: loop body
LE: loop exit
PB: predicated region body
PF: predicated region fallthrough
CT: control target
= control target key end

     0   :  { %s1318_s30 = smov 0   ;;  %s1651_s0 = inlined_call_operand.vmem [shape: f32[512,8], index: 0, kind: input, shape index: {}]   ;;  %s1652_s1 = inlined_call_operand.vmem [shape: f32[512,16], index: 1, kind: input, shape index: {}]   ;;  %s1653_s2 = inlined_call_operand.vmem [shape: f32[32,24], index: 2, kind: input, shape index: {}]   ;;  %s1654_s3 = inlined_call_operand.vmem [shape: f32[32,1], index: 3, kind: input, shape index: {}]   ;;  %s1655_s4 = inlined_call_operand.vmem [shape: f32[32,32], index: 4, kind: input, shape index: {}]   ;;  %s1656_s5 = inlined_call_operand.vmem [shape: f32[32,1], index: 5, kind: input, shape index: {}]   ;;  %s1657_s6 = inlined_call_operand.vmem [shape: f32[16,32], index: 6, kind: input, shape index: {}]   ;;  %s1658_s7 = inlined_call_operand.vmem [shape: f32[16,1], index: 7, kind: input, shape index: {}]   ;;  %s1659_s8 = inlined_call_operand.vmem [shape: f32[16,1], index: 8, kind: input, shape index: {}]   ;;  %s1660_s9 = inlined_call_operand.vmem [shape: f32[512,16], index: 9, kind: output, shape index: {}]  }
   0x1 LB: > { %s1162_s10 = sadd.s32 4294967295, %s1264_s30   ;;  %p1166_p0 = scmp.ge.s32.totalorder %s1264_s30, 1  ;;  %s1264_s30 = sphi %s1318_s30, %s19_s30  }
   0x2   : > { %p299_p1 = scmp.lt.s32.totalorder %s1264_s30, 3 }
   0x4   : > { %p300_p2 = pnand %p1166_p0, %p299_p1 }
   0x5   : > { %s1167_s11 = sshll.u32 (!%p300_p2), %s1162_s10, 5  ;;  %vm578_vm1 = vcmask (!%p300_p2), 195584   ;;  %vm716_vm2 = vcmask (!%p300_p2), 261120  }
   0x6   : > { %303 = sbr.rel (%p300_p2) target bundleno = 1104 (0x450), region = 56  ;;  %p341_p3 = scmp.lt.s32.totalorder (!%p300_p2), %s1167_s11, 63 }
   0xd   : > { %s1676_s11 = smov (!%p341_p3, %s1167_s11), 63 }
   0xe   : > { %s1326_s12 = sshll.u32 %s1676_s11, 3 }
   0xf   : > { %s1332_s15 = scalar_lea.vmem %s1651_s0, %s1326_s12  ;;  %s1344_s18 = scalar_lea.vmem %s1652_s1, %s1326_s12 }
  0x10   : > { %v358_v0 = vld [vmem:[%s1332_s15] sm:$0xff]  ;;  %v359_v2 = vld [vmem:[%s1332_s15 + $0x8] sm:$0xff]  ;;  %v360_v6 = vld [vmem:[%s1332_s15 + $0x10] sm:$0xff]  ;;  %s1582_s27 = scalar_lea.vmem %s1660_s9, %s1326_s12 }
  0x11   : > { %v374_v1 = vld [vmem:[%s1332_s15 + $0x80] sm:$0xff]  ;;  %v375_v4 = vld [vmem:[%s1332_s15 + $0x88] sm:$0xff]  ;;  %v376_v7 = vld [vmem:[%s1332_s15 + $0x90] sm:$0xff] }
  0x12   : > { %v1219_v3 = vpack.i.bf16 %v358_v0, %v374_v1  ;;  %v1221_v5 = vpack.i.bf16 %v359_v2, %v375_v4  ;;  %v1223_v8 = vpack.i.bf16 %v360_v6, %v376_v7  ;;  %v361_v9 = vld [vmem:[%s1332_s15 + $0x18] sm:$0xff]  ;;  %v470_v11 = vld [vmem:[%s1344_s18 + $0x80] sm:$0xff]  ;;  %v471_v15 = vld [vmem:[%s1344_s18 + $0x88] sm:$0xff] }
  0x13   : > { %v377_v10 = vld [vmem:[%s1332_s15 + $0x98] sm:$0xff]  ;;  %518 = vxpose.xlu1.b32.start [1/16] (narrow) %v470_v11, 16  ;;  %v362_v13 = vld [vmem:[%s1332_s15 + $0x20] sm:$0xff]  ;;  %v363_v17 = vld [vmem:[%s1332_s15 + $0x28] sm:$0xff] }
  0x14   : > { %1220 = vxpose.xlu0.b32.start [1/16] (narrow) %v1219_v3, 8  ;;  %v1225_v12 = vpack.i.bf16 %v361_v9, %v377_v10  ;;  %v378_v14 = vld [vmem:[%s1332_s15 + $0xa0] sm:$0xff]  ;;  %v379_v18 = vld [vmem:[%s1332_s15 + $0xa8] sm:$0xff]  ;;  %v472_v19 = vld [vmem:[%s1344_s18 + $0x90] sm:$0xff]  ;;  %v1266_v3 = vmov 0.0  }
  0x15   : > { %v1227_v16 = vpack.i.bf16 %v362_v13, %v378_v14  ;;  %v1229_v20 = vpack.i.bf16 %v363_v17, %v379_v18  ;;  %v364_v21 = vld [vmem:[%s1332_s15 + $0x30] sm:$0xff]  ;;  %v473_v23 = vld [vmem:[%s1344_s18 + $0x98] sm:$0xff]  ;;  %v474_v27 = vld [vmem:[%s1344_s18 + $0xa0] sm:$0xff]  ;;  %655 = vmatprep.mubr.f32.mxu0 %v1266_v3  ;;  %793 = vmatprep.mubr.f32.mxu1 %v1266_v3 }
  0x16   : > { %v380_v22 = vld [vmem:[%s1332_s15 + $0xb0] sm:$0xff]  ;;  %v365_v25 = vld [vmem:[%s1332_s15 + $0x38] sm:$0xff]  ;;  %v366_v29 = vld [vmem:[%s1332_s15 + $0x40] sm:$0xff] }
  0x17   : > { %519 = vxpose.xlu1.b32.cont [2/16] (narrow) %v471_v15, 16  ;;  %v1231_v24 = vpack.i.bf16 %v364_v21, %v380_v22  ;;  %v381_v26 = vld [vmem:[%s1332_s15 + $0xb8] sm:$0xff]  ;;  %v382_v30 = vld [vmem:[%s1332_s15 + $0xc0] sm:$0xff]  ;;  %v475_v31 = vld [vmem:[%s1344_s18 + $0xa8] sm:$0xff] }
  0x18   : > { %1222 = vxpose.xlu0.b32.cont [2/16] (narrow) %v1221_v5, 8  ;;  %v1233_v28 = vpack.i.bf16 %v365_v25, %v381_v26  ;;  %v1235_v32 = vpack.i.bf16 %v366_v29, %v382_v30  ;;  %v367_v33 = vld [vmem:[%s1332_s15 + $0x48] sm:$0xff]  ;;  %v476_v35 = vld [vmem:[%s1344_s18 + $0xb0] sm:$0xff]  ;;  %v477_v39 = vld [vmem:[%s1344_s18 + $0xb8] sm:$0xff] }
  0x19   : > { %v383_v34 = vld [vmem:[%s1332_s15 + $0xc8] sm:$0xff]  ;;  %v368_v37 = vld [vmem:[%s1332_s15 + $0x50] sm:$0xff]  ;;  %v369_v41 = vld [vmem:[%s1332_s15 + $0x58] sm:$0xff] }
  0x1a   : > { %v1237_v36 = vpack.i.bf16 %v367_v33, %v383_v34  ;;  %v384_v38 = vld [vmem:[%s1332_s15 + $0xd0] sm:$0xff]  ;;  %v385_v42 = vld [vmem:[%s1332_s15 + $0xd8] sm:$0xff]  ;;  %v478_v43 = vld [vmem:[%s1344_s18 + $0xc0] sm:$0xff] }
  0x1b   : > { %520 = vxpose.xlu1.b32.cont [3/16] (narrow) %v472_v19, 16  ;;  %v1239_v40 = vpack.i.bf16 %v368_v37, %v384_v38  ;;  %v1241_v44 = vpack.i.bf16 %v369_v41, %v385_v42  ;;  %v370_v45 = vld [vmem:[%s1332_s15 + $0x60] sm:$0xff]  ;;  %v479_v47 = vld [vmem:[%s1344_s18 + $0xc8] sm:$0xff]  ;;  %v480_v51 = vld [vmem:[%s1344_s18 + $0xd0] sm:$0xff] }
  0x1c   : > { %1224 = vxpose.xlu0.b32.cont [3/16] (narrow) %v1223_v8, 8  ;;  %v386_v46 = vld [vmem:[%s1332_s15 + $0xe0] sm:$0xff]  ;;  %v371_v49 = vld [vmem:[%s1332_s15 + $0x68] sm:$0xff]  ;;  %v372_v53 = vld [vmem:[%s1332_s15 + $0x70] sm:$0xff] }
  0x1d   : > { %v1243_v48 = vpack.i.bf16 %v370_v45, %v386_v46  ;;  %v387_v50 = vld [vmem:[%s1332_s15 + $0xe8] sm:$0xff]  ;;  %v388_v54 = vld [vmem:[%s1332_s15 + $0xf0] sm:$0xff]  ;;  %v481_v55 = vld [vmem:[%s1344_s18 + $0xd8] sm:$0xff] }
  0x1e   : > { %v1245_v52 = vpack.i.bf16 %v371_v49, %v387_v50  ;;  %v1247_v56 = vpack.i.bf16 %v372_v53, %v388_v54  ;;  %v373_v57 = vld [vmem:[%s1332_s15 + $0x78] sm:$0xff]  ;;  %v482_v59 = vld [vmem:[%s1344_s18 + $0xe0] sm:$0xff]  ;;  %v483_v61 = vld [vmem:[%s1344_s18 + $0xe8] sm:$0xff] }
  0x1f   : > { %521 = vxpose.xlu1.b32.cont [4/16] (narrow) %v473_v23, 16  ;;  %v389_v58 = vld [vmem:[%s1332_s15 + $0xf8] sm:$0xff]  ;;  %v454_v62 = vld [vmem:[%s1344_s18] sm:$0xff]  ;;  %v484_v63 = vld [vmem:[%s1344_s18 + $0xf0] sm:$0xff] }
  0x20   : > { %1226 = vxpose.xlu0.b32.cont [4/16] (narrow) %v1225_v12, 8  ;;  %v1249_v60 = vpack.i.bf16 %v373_v57, %v389_v58  ;;  %v455_v0 = vld [vmem:[%s1344_s18 + $0x8] sm:$0xff]  ;;  %v485_v1 = vld [vmem:[%s1344_s18 + $0xf8] sm:$0xff]  ;;  %v456_v2 = vld [vmem:[%s1344_s18 + $0x10] sm:$0xff]  ;;  %v1267_v12 = vmov 0  }
  0x21   : > { %v457_v4 = vld [vmem:[%s1344_s18 + $0x18] sm:$0xff]  ;;  %v458_v5 = vld [vmem:[%s1344_s18 + $0x20] sm:$0xff]  ;;  %v459_v6 = vld [vmem:[%s1344_s18 + $0x28] sm:$0xff] }
  0x22   : > { %v460_v7 = vld [vmem:[%s1344_s18 + $0x30] sm:$0xff]  ;;  %v461_v8 = vld [vmem:[%s1344_s18 + $0x38] sm:$0xff]  ;;  %v462_v9 = vld [vmem:[%s1344_s18 + $0x40] sm:$0xff] }
  0x23   : > { %522 = vxpose.xlu1.b32.cont [5/16] (narrow) %v474_v27, 16  ;;  %v554_v10 = vld [vmem:[%s1654_s3] sm:$0xff]  ;;  %v463_v11 = vld [vmem:[%s1344_s18 + $0x48] sm:$0xff]  ;;  %v464_v14 = vld [vmem:[%s1344_s18 + $0x50] sm:$0xff] }
  0x24   : > { %1228 = vxpose.xlu0.b32.cont [5/16] (narrow) %v1227_v16, 8  ;;  %v555_v13 = vld [vmem:[%s1654_s3 + $0x8] sm:$0xff]  ;;  %v556_v15 = vld [vmem:[%s1654_s3 + $0x10] sm:$0xff]  ;;  %v465_v16 = vld [vmem:[%s1344_s18 + $0x58] sm:$0xff] }
  0x25   : > { %v557_v17 = vld [vmem:[%s1654_s3 + $0x18] sm:$0xff]  ;;  %v466_v18 = vld [vmem:[%s1344_s18 + $0x60] sm:$0xff]  ;;  %v693_v21 = vld [vmem:[%s1656_s5 + $0x8] sm:$0xff] }
  0x26   : > { %v692_v19 = vld [vmem:[%s1656_s5] sm:$0xff]  ;;  %v468_v22 = vld [vmem:[%s1344_s18 + $0x70] sm:$0xff]  ;;  %v695_v25 = vld [vmem:[%s1656_s5 + $0x18] sm:$0xff] }
  0x27   : > { %523 = vxpose.xlu1.b32.cont [6/16] (narrow) %v475_v31, 16  ;;  %v694_v23 = vld [vmem:[%s1656_s5 + $0x10] sm:$0xff]  ;;  %v828_v27 = vld [vmem:[%s1658_s7] sm:$0xff]  ;;  %v829_v29 = vld [vmem:[%s1658_s7 + $0x8] sm:$0xff] }
  0x28   : > { %1230 = vxpose.xlu0.b32.cont [6/16] (narrow) %v1229_v20, 8  ;;  %v467_v20 = vld [vmem:[%s1344_s18 + $0x68] sm:$0xff]  ;;  %v550_v38 = vld [vmem:[%s1653_s2] sm:$0xff]  ;;  %v552_v41 = vld [vmem:[%s1653_s2 + $0x10] sm:$0xff] }
  0x29   : > { %v553_v42 = vld [vmem:[%s1653_s2 + $0x18] sm:$0xff] }
  0x2b   : > { %524 = vxpose.xlu1.b32.cont [7/16] (narrow) %v476_v35, 16 }
  0x2c   : > { %1232 = vxpose.xlu0.b32.cont [7/16] (narrow) %v1231_v24, 8  ;;  %v469_v24 = vld [vmem:[%s1344_s18 + $0x78] sm:$0xff] }
  0x2f   : > { %525 = vxpose.xlu1.b32.cont [8/16] (narrow) %v477_v39, 16 }
  0x30   : > { %1234 = vxpose.xlu0.b32.cont [8/16] (narrow) %v1233_v28, 8  ;;  %v976_v28 = vld [vmem:[%s1659_s8 + $0x8] sm:$0xff] }
  0x31   : > { %vm978_vm0 = vcmp.gt.f32.partialorder %v976_v28, 0.5 }
  0x33   : > { %526 = vxpose.xlu1.b32.cont [9/16] (narrow) %v478_v43, 16 }
  0x34   : > { %1236 = vxpose.xlu0.b32.cont [9/16] (narrow) %v1235_v32, 8  ;;  %v984_v32 = vsel %vm978_vm0, 1, %v1267_v12 }
  0x37   : > { %527 = vxpose.xlu1.b32.cont [10/16] (narrow) %v479_v47, 16 }
  0x38   : > { %1238 = vxpose.xlu0.b32.cont [10/16] (narrow) %v1237_v36, 8 }
  0x3b   : > { %528 = vxpose.xlu1.b32.cont [11/16] (narrow) %v480_v51, 16 }
  0x3c   : > { %1240 = vxpose.xlu0.b32.cont [11/16] (narrow) %v1239_v40, 8  ;;  %v551_v40 = vld [vmem:[%s1653_s2 + $0x8] sm:$0xff] }
  0x3f   : > { %529 = vxpose.xlu1.b32.cont [12/16] (narrow) %v481_v55, 16 }
  0x40   : > { %1242 = vxpose.xlu0.b32.cont [12/16] (narrow) %v1241_v44, 8 }
  0x43   : > { %530 = vxpose.xlu1.b32.cont [13/16] (narrow) %v482_v59, 16 }
  0x44   : > { %1244 = vxpose.xlu0.b32.cont [13/16] (narrow) %v1243_v48, 8 }
  0x47   : > { %531 = vxpose.xlu1.b32.cont [14/16] (narrow) %v483_v61, 16 }
  0x48   : > { %1246 = vxpose.xlu0.b32.cont [14/16] (narrow) %v1245_v52, 8 }
  0x4b   : > { %532 = vxpose.xlu1.b32.cont [15/16] (narrow) %v484_v63, 16 }
  0x4c   : > { %1248 = vxpose.xlu0.b32.cont [15/16] (narrow) %v1247_v56, 8 }
  0x4f   : > { %533 = vxpose.xlu1.b32.end [16/16] (narrow) %v485_v1, 16 }
  0x50   : > { %1250 = vxpose.xlu0.b32.end [16/16] (narrow) %v1249_v60, 8 }
  0x54   : > { %486 = vxpose.xlu0.b32.start [1/16] (narrow) %v454_v62, 16 }
  0x58   : > { %487 = vxpose.xlu0.b32.cont [2/16] (narrow) %v455_v0, 16 }
  0x5c   : > { %488 = vxpose.xlu0.b32.cont [3/16] (narrow) %v456_v2, 16 }
  0x60   : > { %489 = vxpose.xlu0.b32.cont [4/16] (narrow) %v457_v4, 16 }
  0x64   : > { %490 = vxpose.xlu0.b32.cont [5/16] (narrow) %v458_v5, 16 }
  0x68   : > { %491 = vxpose.xlu0.b32.cont [6/16] (narrow) %v459_v6, 16 }
  0x6c   : > { %492 = vxpose.xlu0.b32.cont [7/16] (narrow) %v460_v7, 16 }
  0x6d   : > { %1256 = vset.pattern.permute.xlu1 %v1267_v12 }
  0x6e   : > { %560 = vperm.xlu1 %1256, %v554_v10  }
  0x70   : > { %493 = vxpose.xlu0.b32.cont [8/16] (narrow) %v461_v8, 16 }
  0x72   : > { %565 = vperm.xlu1 %1256, %v555_v13   ;;  %v688_v13 = vld [vmem:[%s1655_s4] sm:$0xff] }
  0x74   : > { %494 = vxpose.xlu0.b32.cont [9/16] (narrow) %v462_v9, 16 }
  0x76   : > { %570 = vperm.xlu1 %1256, %v556_v15   ;;  %v690_v15 = vld [vmem:[%s1655_s4 + $0x10] sm:$0xff] }
  0x78   : > { %495 = vxpose.xlu0.b32.cont [10/16] (narrow) %v463_v11, 16 }
  0x7a   : > { %575 = vperm.xlu1 %1256, %v557_v17   ;;  %v975_v17 = vld [vmem:[%s1659_s8] sm:$0xff] }
  0x7b   : > { %vm977_vm3 = vcmp.gt.f32.partialorder %v975_v17, 0.5 }
  0x7c   : > { %496 = vxpose.xlu0.b32.cont [11/16] (narrow) %v464_v14, 16  ;;  %v689_v14 = vld [vmem:[%s1655_s4 + $0x8] sm:$0xff] }
  0x7e   : > { %698 = vperm.xlu1 %1256, %v692_v19  }
  0x80   : > { %497 = vxpose.xlu0.b32.cont [12/16] (narrow) %v465_v16, 16  ;;  %v691_v16 = vld [vmem:[%s1655_s4 + $0x18] sm:$0xff] }
  0x82   : > { %703 = vperm.xlu1 %1256, %v693_v21  }
  0x84   : > { %498 = vxpose.xlu0.b32.cont [13/16] (narrow) %v466_v18, 16  ;;  %v983_v18 = vsel %vm977_vm3, 1, %v1267_v12 }
  0x86   : > { %708 = vperm.xlu1 %1256, %v694_v23  }
  0x88   : > { %499 = vxpose.xlu0.b32.cont [14/16] (narrow) %v467_v20, 16 }
  0x8a   : > { %713 = vperm.xlu1 %1256, %v695_v25  }
  0x8c   : > { %500 = vxpose.xlu0.b32.cont [15/16] (narrow) %v468_v22, 16 }
  0x8e   : > { %832 = vperm.xlu1 %1256, %v828_v27  }
  0x90   : > { %501 = vxpose.xlu0.b32.end [16/16] (narrow) %v469_v24, 16 }
  0x92   : > { %837 = vperm.xlu1 %1256, %v829_v29  }
  0x93   : > { %v1440_v31 = vpop.trf.xlu1 }
  0x94   : > { %v1251_v26 = vpop.trf.xlu0 }
  0x95   : > { %v1252_v30 = vunpack.i.l.bf16 %v1251_v26  ;;  %v1255_v34 = vunpack.i.h.bf16 %v1251_v26 }
  0x96   : > { %989 = vperm.xlu1 %1256, %v984_v32  }
  0x97   : > { %v1185_v33 = vpack.c.bf16 %v1440_v31, %v1252_v30  ;;  %v1448_v37 = vpop.trf.xlu1 }
  0x99   : > { %1186 = vmatprep.subr.bf16.mxu0 %v1185_v33 }
  0xb9   : > { %1257 = vset.pattern.permute.xlu0 %v1267_v12 }
  0xba   : > { %986 = vperm.xlu0 %1257, %v983_v18  }
  0xd4   : > { %v1445_v35 = vpop.trf.xlu0 }
  0xd5   : > { %v1187_v36 = vpack.c.bf16 %v1445_v35, %v1255_v34 }
  0xd7   : > { %1188 = vmatpush1.bf16.msra.mxu0 %v1187_v36 }
  0xd8   : > { %595 = vmatprep.subr.mxu0 %v1448_v37  ;;  %v1454_v39 = vpop.trf.xlu0 }
  0xdb   : > { %596 = vmatpush1.msra.mxu0 %v1454_v39 }
  0xdc   : > { %1173 = vmatmul.mubr.msk.f32.vlgmr.msra.gmra.mrb[0].mxu0 %vm578_vm1, %v550_v38 }
  0xdd   : > { %661 = vmatprep.mubr.f32.mxu0 %v1266_v3 }
  0xe0   : > { %1174 = vmatmul.mubr.msk.f32.gmra.mrb[2].mxu0 %vm578_vm1, %v551_v40 }
  0xe1   : > { %667 = vmatprep.mubr.f32.mxu0 %v1266_v3 }
  0xe4   : > { %1175 = vmatmul.mubr.msk.f32.gmra.mrb[4].mxu0 %vm578_vm1, %v552_v41 }
  0xe5   : > { %673 = vmatprep.mubr.f32.mxu0 %v1266_v3 }
  0xe8   : > { %1176 = vmatmul.mubr.msk.f32.gmra.mrb[6].mxu0 %vm578_vm1, %v553_v42 }
  0xe9   : > { %910 = vmatprep.mubr.f32.mxu0 %v1266_v3 }
  0xed   : > { %v561_v43 = vpop.permute.xlu1 %560 }
  0xf1   : > { %v566_v44 = vpop.permute.xlu1 %565 }
  0xf5   : > { %v571_v52 = vpop.permute.xlu1 %570 }
  0xf9   : > { %v576_v63 = vpop.permute.xlu1 %575 }
  0xfd   : > { %v699_v19 = vpop.permute.xlu1 %698 }
 0x101   : > { %v704_v20 = vpop.permute.xlu1 %703 }
 0x105   : > { %v709_v28 = vpop.permute.xlu1 %708 }
 0x109   : > { %v714_v42 = vpop.permute.xlu1 %713 }
 0x1af   : > { %v657_v45 = vpop.f32.mrb[0].mxu0 }
 0x1b0   : > { %v659_v46 = vpop.f32.mrb[1].mxu0  ;;  %v658_v47 = vadd.f32 %v657_v45, %v561_v43 }
 0x1b1   : > { %v660_v48 = vadd.f32 %v659_v46, %v561_v43 }
 0x1b2   : > { %v680_v54 = vmax.f32 %v658_v47, 0.0 }
 0x1b3   : > { %v663_v49 = vpop.f32.mrb[2].mxu0  ;;  %v681_v56 = vmax.f32 %v660_v48, 0.0 }
 0x1b4   : > { %v664_v50 = vadd.f32 %v663_v49, %v566_v44  ;;  %v665_v51 = vpop.f32.mrb[3].mxu0 }
 0x1b5   : > { %v666_v53 = vadd.f32 %v665_v51, %v566_v44 }
 0x1b6   : > { %v682_v55 = vmax.f32 %v664_v50, 0.0 }
 0x1b7   : > { %v683_v57 = vmax.f32 %v666_v53, 0.0  ;;  %v669_v58 = vpop.f32.mrb[4].mxu0 }
 0x1b8   : > { %v671_v59 = vpop.f32.mrb[5].mxu0  ;;  %v1191_v60 = vpack.c.bf16 %v682_v55, %v680_v54  ;;  %v670_v62 = vadd.f32 %v669_v58, %v571_v52  ;;  %v826_v54 = vld [vmem:[%s1657_s6] sm:$0xff]  ;;  %v827_v55 = vld [vmem:[%s1657_s6 + $0x8] sm:$0xff]  ;;  %v930_v58 = vfloor.f32 %v1448_v37 }
 0x1b9   : > { %v1189_v61 = vpack.c.bf16 %v683_v57, %v681_v56  ;;  %v672_v0 = vadd.f32 %v671_v59, %v571_v52  ;;  %v928_v56 = vfloor.f32 %v1440_v31  ;;  %v932_v57 = vceil.f32 %v1440_v31 }
 0x1ba   : > { %v684_v6 = vmax.f32 %v670_v62, 0.0  ;;  %v927_v59 = vfloor.f32 %v1445_v35  ;;  %v929_v62 = vfloor.f32 %v1454_v39 }
 0x1bb   : > { %v675_v1 = vpop.f32.mrb[6].mxu0  ;;  %1190 = vmatprep.subr.bf16.mxu1 %v1189_v61  ;;  %v685_v8 = vmax.f32 %v672_v0, 0.0  ;;  %v931_v61 = vceil.f32 %v1445_v35  ;;  %v933_v0 = vceil.f32 %v1454_v39 }
 0x1bc   : > { %v676_v2 = vadd.f32 %v675_v1, %v576_v63  ;;  %v677_v4 = vpop.f32.mrb[7].mxu0  ;;  %1192 = vmatpush1.bf16.msra.mxu1 %v1191_v60  ;;  %v934_v60 = vceil.f32 %v1448_v37  ;;  %v944_v1 = vsub.f32 %v1440_v31, %v928_v56 }
 0x1bd   : > { %v678_v5 = vadd.f32 %v677_v4, %v576_v63  ;;  %v833_v63 = vpop.permute.xlu1 %832  ;;  %v946_v4 = vsub.f32 %v1448_v37, %v930_v58 }
 0x1be   : > { %v686_v7 = vmax.f32 %v676_v2, 0.0  ;;  %v960_v2 = vsub.f32 %v1440_v31, %v932_v57 }
 0x1bf   : > { %v687_v9 = vmax.f32 %v678_v5, 0.0  ;;  %v943_v5 = vsub.f32 %v1445_v35, %v927_v59 }
 0x1c0   : > { %v1195_v10 = vpack.c.bf16 %v686_v7, %v684_v6  ;;  %v962_v6 = vsub.f32 %v1448_v37, %v934_v60  ;;  %v959_v7 = vsub.f32 %v1445_v35, %v931_v61 }
 0x1c1   : > { %v1193_v11 = vpack.c.bf16 %v687_v9, %v685_v8  ;;  %v945_v8 = vsub.f32 %v1454_v39, %v929_v62  ;;  %v961_v9 = vsub.f32 %v1454_v39, %v933_v0 }
 0x1c2   : > { %v963_v18 = vand.u32 2147483647, %v959_v7 }
 0x1c3   : > { %1194 = vmatprep.subr.bf16.mxu1 %v1193_v11  ;;  %v964_v11 = vand.u32 2147483647, %v960_v2 }
 0x1c4   : > { %1196 = vmatpush1.bf16.msra.mxu1 %v1195_v10  ;;  %v948_v10 = vand.u32 2147483647, %v944_v1  ;;  %vm1542_vm9 = vcmp.lt.f32.partialorder %v963_v18, 0.001 }
 0x1c5   : > { %vm1526_vm5 = vcmp.lt.f32.partialorder %v964_v11, 0.001 }
 0x1c6   : > { %vm1522_vm4 = vcmp.lt.f32.partialorder %v948_v10, 0.001 }
 0x1c7   : > { %1177 = vmatmul.mubr.msk.f32.vlgmr.msra.gmra.mrb[0].mxu1 %vm716_vm2, %v688_v13  ;;  %v950_v13 = vand.u32 2147483647, %v946_v4 }
 0x1c8   : > { %799 = vmatprep.mubr.f32.mxu1 %v1266_v3 }
 0x1c9   : > { %vm1530_vm6 = vcmp.lt.f32.partialorder %v950_v13, 0.001 }
 0x1cb   : > { %1178 = vmatmul.mubr.msk.f32.gmra.mrb[2].mxu1 %vm716_vm2, %v689_v14  ;;  %v838_v14 = vpop.permute.xlu1 %837 }
 0x1cc   : > { %805 = vmatprep.mubr.f32.mxu1 %v1266_v3 }
 0x1cf   : > { %1179 = vmatmul.mubr.msk.f32.gmra.mrb[4].mxu1 %vm716_vm2, %v690_v15  ;;  %v947_v15 = vand.u32 2147483647, %v943_v5  ;;  %v990_v57 = vpop.permute.xlu1 %989 }
 0x1d0   : > { %811 = vmatprep.mubr.f32.mxu1 %v1266_v3  ;;  %vm992_vm1 = vcmp.eq.s32.totalorder %v990_v57, 1 }
 0x1d1   : > { %vm1534_vm7 = vcmp.lt.f32.partialorder %v947_v15, 0.001 }
 0x1d3   : > { %1180 = vmatmul.mubr.msk.f32.gmra.mrb[6].mxu1 %vm716_vm2, %v691_v16  ;;  %v966_v16 = vand.u32 2147483647, %v962_v6 }
 0x1d4   : > { %916 = vmatprep.mubr.f32.mxu1 %v1266_v3 }
 0x1d5   : > { %vm1538_vm8 = vcmp.lt.f32.partialorder %v966_v16, 0.001 }
 0x29a   : > { %v795_v21 = vpop.f32.mrb[0].mxu1 }
 0x29b   : > { %v797_v22 = vpop.f32.mrb[1].mxu1  ;;  %v796_v23 = vadd.f32 %v795_v21, %v699_v19 }
 0x29c   : > { %v798_v24 = vadd.f32 %v797_v22, %v699_v19 }
 0x29d   : > { %v818_v30 = vmax.f32 %v796_v23, 0.0  ;;  %v965_v23 = vand.u32 2147483647, %v961_v9 }
 0x29e   : > { %v801_v25 = vpop.f32.mrb[2].mxu1  ;;  %v819_v33 = vmax.f32 %v798_v24, 0.0 }
 0x29f   : > { %v802_v26 = vadd.f32 %v801_v25, %v704_v20  ;;  %v803_v27 = vpop.f32.mrb[3].mxu1  ;;  %vm969_vm13 = vcmp.lt.f32.partialorder %v965_v23, 0.001 }
 0x2a0   : > { %v804_v29 = vadd.f32 %v803_v27, %v704_v20  ;;  %v949_v20 = vand.u32 2147483647, %v945_v8 }
 0x2a1   : > { %v820_v32 = vmax.f32 %v802_v26, 0.0 }
 0x2a2   : > { %v821_v34 = vmax.f32 %v804_v29, 0.0  ;;  %v807_v36 = vpop.f32.mrb[4].mxu1  ;;  %vm1546_vm10 = vcmp.lt.f32.partialorder %v949_v20, 0.001 }
 0x2a3   : > { %v1199_v38 = vpack.c.bf16 %v820_v32, %v818_v30  ;;  %v809_v40 = vpop.f32.mrb[5].mxu1  ;;  %v808_v41 = vadd.f32 %v807_v36, %v709_v28  ;;  %v987_v32 = vpop.permute.xlu0 %986 }
 0x2a4   : > { %v1197_v12 = vpack.c.bf16 %v821_v34, %v819_v33  ;;  %v810_v43 = vadd.f32 %v809_v40, %v709_v28  ;;  %vm991_vm14 = vcmp.eq.s32.totalorder %v987_v32, 1 }
 0x2a5   : > { %v822_v48 = vmax.f32 %v808_v41, 0.0 }
 0x2a6   : > { %v813_v44 = vpop.f32.mrb[6].mxu1  ;;  %1198 = vmatprep.subr.bf16.mxu0 %v1197_v12  ;;  %1205 = vmatprep.subr.bf16.mxu1 %v1197_v12  ;;  %v823_v50 = vmax.f32 %v810_v43, 0.0 }
 0x2a7   : > { %v814_v45 = vadd.f32 %v813_v44, %v714_v42  ;;  %v815_v46 = vpop.f32.mrb[7].mxu1  ;;  %1200 = vmatpush1.bf16.msra.mxu0 %v1199_v38  ;;  %1207 = vmatpush1.bf16.msra.mxu1 %v1199_v38 }
 0x2a8   : > { %v816_v47 = vadd.f32 %v815_v46, %v714_v42 }
 0x2a9   : > { %v824_v49 = vmax.f32 %v814_v45, 0.0 }
 0x2aa   : > { %v825_v51 = vmax.f32 %v816_v47, 0.0 }
 0x2ab   : > { %v1203_v52 = vpack.c.bf16 %v824_v49, %v822_v48 }
 0x2ac   : > { %v1201_v53 = vpack.c.bf16 %v825_v51, %v823_v50 }
 0x2ae   : > { %1202 = vmatprep.subr.bf16.mxu0 %v1201_v53  ;;  %1206 = vmatprep.subr.bf16.mxu1 %v1201_v53 }
 0x2af   : > { %1204 = vmatpush1.bf16.msra.mxu0 %v1203_v52  ;;  %1208 = vmatpush1.bf16.msra.mxu1 %v1203_v52 }
 0x2b2   : > { %1181 = vmatmul.mubr.msk.f32.vlgmr.msra.gmra.mrb[8].mxu0 %vm716_vm2, %v826_v54  ;;  %1182 = vmatmul.mubr.msk.f32.vlgmr.msra.gmra.mrb[8].mxu1 %vm716_vm2, %v827_v55  ;;  %vm1061_vm2 = vcmask 130048  }
 0x385   : > { %v912_v17 = vpop.f32.mrb[8].mxu0  ;;  %v918_v19 = vpop.f32.mrb[8].mxu1 }
 0x386   : > { %v913_v21 = vadd.f32 %v912_v17, %v833_v63  ;;  %v919_v22 = vadd.f32 %v918_v19, %v838_v14  ;;  %v914_v24 = vpop.f32.mrb[9].mxu0  ;;  %v920_v26 = vpop.f32.mrb[9].mxu1 }
 0x387   : > { %v915_v27 = vadd.f32 %v914_v24, %v833_v63  ;;  %v921_v29 = vadd.f32 %v920_v26, %v838_v14 }
 0x388   : > { %v923_v33 = vmax.f32 %v913_v21, 0.0  ;;  %v925_v36 = vmax.f32 %v919_v22, 0.0 }
 0x389   : > { %v924_v41 = vmax.f32 %v915_v27, 0.0  ;;  %v926_v42 = vmax.f32 %v921_v29, 0.0 }
 0x38a   : > { %vm935_vm11 = vcmp.ge.f32.partialorder %v923_v33, 0.0  ;;  %vm937_vm12 = vcmp.ge.f32.partialorder %v925_v36, 0.0 }
 0x38b   : > { %v939_v43 = vsel %vm935_vm11, 1.0, %v1266_v3  ;;  %v941_v44 = vsel %vm937_vm12, 1.0, %v1266_v3  ;;  %vm936_vm15 = vcmp.ge.f32.partialorder %v924_v41, 0.0  ;;  %vm938_vm0 = vcmp.ge.f32.partialorder %v926_v42, 0.0 }
 0x38c   : > { %v955_v45 = vsel %vm1534_vm7, 0.0, %v939_v43  ;;  %v957_v46 = vsel %vm1546_vm10, 0.0, %v941_v44  ;;  %v940_v47 = vsel %vm936_vm15, 1.0, %v1266_v3  ;;  %v942_v48 = vsel %vm938_vm0, 1.0, %v1266_v3 }
 0x38d   : > { %v971_v49 = vsel %vm1542_vm9, 1.0, %v955_v45  ;;  %v973_v50 = vsel %vm969_vm13, 1.0, %v957_v46  ;;  %v956_v51 = vsel %vm1522_vm4, 0.0, %v940_v47  ;;  %v958_v52 = vsel %vm1530_vm6, 0.0, %v942_v48 }
 0x38e   : > { %v979_v53 = vadd.f32 %v971_v49, %v927_v59  ;;  %v972_v54 = vsel %vm1526_vm5, 1.0, %v956_v51  ;;  %v974_v55 = vsel %vm1538_vm8, 1.0, %v958_v52  ;;  %v981_v60 = vadd.f32 %v973_v50, %v929_v62 }
 0x38f   : > { %v980_v3 = vadd.f32 %v972_v54, %v928_v56  ;;  %v982_v63 = vadd.f32 %v974_v55, %v930_v58 }
 0x390   : > { %v993_v61 = vsel %vm991_vm14, %v979_v53, %v1445_v35  ;;  %v995_v0 = vsel %vm992_vm1, %v981_v60, %v1454_v39 }
 0x391   : > { %v994_v59 = vsel %vm991_vm14, %v980_v3, %v1440_v31  ;;  %997 = vxpose.xlu1.b32.start [1/2] (short) %v993_v61, 128  ;;  %v996_v1 = vsel %vm992_vm1, %v982_v63, %v1448_v37 }
 0x392   : > { %1029 = vxpose.xlu0.b32.start [1/2] (short) %v994_v59, 128 }
 0x395   : > { %998 = vxpose.xlu1.b32.end [2/2] (short) %v995_v0, 128 }
 0x396   : > { %1030 = vxpose.xlu0.b32.end [2/2] (short) %v996_v1, 128 }
 0x411   : > { %v1013_v31 = vpop.trf.xlu1 }
 0x412   : > { %v1045_v35 = vpop.trf.xlu0  ;;  %1062 = vst.msk [vmem:[%s1582_s27] sm:$0xff] %vm1061_vm2, %v1013_v31 }
 0x413   : > { %1078 = vst.msk [vmem:[%s1582_s27 + $0x80] sm:$0xff] %vm1061_vm2, %v1045_v35 }
 0x415   : > { %v1014_v37 = vpop.trf.xlu1 }
 0x416   : > { %v1046_v39 = vpop.trf.xlu0  ;;  %1063 = vst.msk [vmem:[%s1582_s27 + $0x8] sm:$0xff] %vm1061_vm2, %v1014_v37 }
 0x417   : > { %1079 = vst.msk [vmem:[%s1582_s27 + $0x88] sm:$0xff] %vm1061_vm2, %v1046_v39 }
 0x419   : > { %v1015_v56 = vpop.trf.xlu1 }
 0x41a   : > { %v1047_v58 = vpop.trf.xlu0  ;;  %1064 = vst.msk [vmem:[%s1582_s27 + $0x10] sm:$0xff] %vm1061_vm2, %v1015_v56 }
 0x41b   : > { %1080 = vst.msk [vmem:[%s1582_s27 + $0x90] sm:$0xff] %vm1061_vm2, %v1047_v58 }
 0x41d   : > { %v1016_v62 = vpop.trf.xlu1 }
 0x41e   : > { %v1048_v2 = vpop.trf.xlu0  ;;  %1065 = vst.msk [vmem:[%s1582_s27 + $0x18] sm:$0xff] %vm1061_vm2, %v1016_v62 }
 0x41f   : > { %1081 = vst.msk [vmem:[%s1582_s27 + $0x98] sm:$0xff] %vm1061_vm2, %v1048_v2 }
 0x421   : > { %v1017_v4 = vpop.trf.xlu1 }
 0x422   : > { %v1049_v5 = vpop.trf.xlu0  ;;  %1066 = vst.msk [vmem:[%s1582_s27 + $0x20] sm:$0xff] %vm1061_vm2, %v1017_v4 }
 0x423   : > { %1082 = vst.msk [vmem:[%s1582_s27 + $0xa0] sm:$0xff] %vm1061_vm2, %v1049_v5 }
 0x425   : > { %v1018_v6 = vpop.trf.xlu1 }
 0x426   : > { %v1050_v7 = vpop.trf.xlu0  ;;  %1067 = vst.msk [vmem:[%s1582_s27 + $0x28] sm:$0xff] %vm1061_vm2, %v1018_v6 }
 0x427   : > { %1083 = vst.msk [vmem:[%s1582_s27 + $0xa8] sm:$0xff] %vm1061_vm2, %v1050_v7 }
 0x429   : > { %v1019_v8 = vpop.trf.xlu1 }
 0x42a   : > { %v1051_v9 = vpop.trf.xlu0  ;;  %1068 = vst.msk [vmem:[%s1582_s27 + $0x30] sm:$0xff] %vm1061_vm2, %v1019_v8 }
 0x42b   : > { %1084 = vst.msk [vmem:[%s1582_s27 + $0xb0] sm:$0xff] %vm1061_vm2, %v1051_v9 }
 0x42d   : > { %v1020_v10 = vpop.trf.xlu1 }
 0x42e   : > { %v1052_v11 = vpop.trf.xlu0  ;;  %1069 = vst.msk [vmem:[%s1582_s27 + $0x38] sm:$0xff] %vm1061_vm2, %v1020_v10 }
 0x42f   : > { %1085 = vst.msk [vmem:[%s1582_s27 + $0xb8] sm:$0xff] %vm1061_vm2, %v1052_v11 }
 0x431   : > { %v1021_v13 = vpop.trf.xlu1 }
 0x432   : > { %v1053_v14 = vpop.trf.xlu0  ;;  %1070 = vst.msk [vmem:[%s1582_s27 + $0x40] sm:$0xff] %vm1061_vm2, %v1021_v13 }
 0x433   : > { %1086 = vst.msk [vmem:[%s1582_s27 + $0xc0] sm:$0xff] %vm1061_vm2, %v1053_v14 }
 0x435   : > { %v1022_v15 = vpop.trf.xlu1 }
 0x436   : > { %v1054_v16 = vpop.trf.xlu0  ;;  %1071 = vst.msk [vmem:[%s1582_s27 + $0x48] sm:$0xff] %vm1061_vm2, %v1022_v15 }
 0x437   : > { %1087 = vst.msk [vmem:[%s1582_s27 + $0xc8] sm:$0xff] %vm1061_vm2, %v1054_v16 }
 0x439   : > { %v1023_v17 = vpop.trf.xlu1 }
 0x43a   : > { %v1055_v18 = vpop.trf.xlu0  ;;  %1072 = vst.msk [vmem:[%s1582_s27 + $0x50] sm:$0xff] %vm1061_vm2, %v1023_v17 }
 0x43b   : > { %1088 = vst.msk [vmem:[%s1582_s27 + $0xd0] sm:$0xff] %vm1061_vm2, %v1055_v18 }
 0x43d   : > { %v1024_v19 = vpop.trf.xlu1 }
 0x43e   : > { %v1056_v20 = vpop.trf.xlu0  ;;  %1073 = vst.msk [vmem:[%s1582_s27 + $0x58] sm:$0xff] %vm1061_vm2, %v1024_v19 }
 0x43f   : > { %1089 = vst.msk [vmem:[%s1582_s27 + $0xd8] sm:$0xff] %vm1061_vm2, %v1056_v20 }
 0x441   : > { %v1025_v21 = vpop.trf.xlu1 }
 0x442   : > { %v1057_v22 = vpop.trf.xlu0  ;;  %1074 = vst.msk [vmem:[%s1582_s27 + $0x60] sm:$0xff] %vm1061_vm2, %v1025_v21 }
 0x443   : > { %1090 = vst.msk [vmem:[%s1582_s27 + $0xe0] sm:$0xff] %vm1061_vm2, %v1057_v22 }
 0x445   : > { %v1026_v23 = vpop.trf.xlu1 }
 0x446   : > { %v1058_v24 = vpop.trf.xlu0  ;;  %1075 = vst.msk [vmem:[%s1582_s27 + $0x68] sm:$0xff] %vm1061_vm2, %v1026_v23 }
 0x447   : > { %1091 = vst.msk [vmem:[%s1582_s27 + $0xe8] sm:$0xff] %vm1061_vm2, %v1058_v24 }
 0x449   : > { %v1027_v25 = vpop.trf.xlu1 }
 0x44a   : > { %v1059_v26 = vpop.trf.xlu0  ;;  %1076 = vst.msk [vmem:[%s1582_s27 + $0x70] sm:$0xff] %vm1061_vm2, %v1027_v25 }
 0x44b   : > { %1092 = vst.msk [vmem:[%s1582_s27 + $0xf0] sm:$0xff] %vm1061_vm2, %v1059_v26 }
 0x44d   : > { %v1028_v27 = vpop.trf.xlu1 }
 0x44e   : > { %v1060_v28 = vpop.trf.xlu0  ;;  %1077 = vst.msk [vmem:[%s1582_s27 + $0x78] sm:$0xff] %vm1061_vm2, %v1028_v27 }
 0x44f   : > { %1093 = vst.msk [vmem:[%s1582_s27 + $0xf8] sm:$0xff] %vm1061_vm2, %v1060_v28 }
 0x450 PF: > { %s19_s30 = sadd.s32 1, %s1264_s30  }
 0x451   : > { %p16_p4 = scmp.ge.s32.totalorder %s19_s30, 4  }
 0x453   :  { %18 = sbr.rel (!%p16_p4) target bundleno = 1 (0x1), region = 89 }

</bundles_post_ra>
